<compile_context>
chip_gen: v7x
topology: tpu7x:2x2x1
jax: 0.10.0
libtpu: 0.0.40
codegen_flags: <defaults>
</compile_context>

<pallas_src>
import functools
import math

import jax
import jax.numpy as jnp
from jax import lax
from jax.experimental import pallas as pl
from jax.experimental.pallas import tpu as pltpu

NEG_BIG = -1.0e30  # finite "-inf" so online softmax never produces NaN


@functools.lru_cache(maxsize=1)
def _vmem_limit_bytes():
    """Generation-aware VMEM budget (v7x ~48 MiB, v5e/v6e ~112 MiB)."""
    try:
        cap = int(pltpu.get_tpu_info().vmem_capacity_bytes)
        return min(112 * 1024 * 1024, max(32 * 1024 * 1024, cap - 16 * 1024 * 1024))
    except Exception:
        return 48 * 1024 * 1024


def _compiler_params(sem):
    return pltpu.CompilerParams(
        dimension_semantics=sem, vmem_limit_bytes=_vmem_limit_bytes()
    )


def _choose_tile(dim, preferred, granules):
    """Largest tile <= preferred that divides dim and is a multiple of a granule.
    Falls back to the full dimension (always satisfies the (8,128) rule)."""
    # TODO(synk): dims with no multiple-of-granule divisor (e.g. prime B*T) fall
    # back to the full dimension; pad-to-multiple in the wrapper if that ever
    # exceeds the VMEM budget.
    if dim <= preferred:
        return dim
    for g in granules:
        t = (preferred // g) * g
        while t >= g:
            if dim % t == 0:
                return t
            t -= g
    return dim


# ---------------------------------------------------------------------------
# Linear kernels: y = x @ W + b   (bf16 MXU operands, f32 accumulation).
# Single-pass variant (tk == K): one MXU pass, no accumulator scratch.
# ---------------------------------------------------------------------------
def _linear_kernel_single(x_ref, w_ref, b_ref, o_ref):
    acc = jnp.dot(
        x_ref[...].astype(jnp.bfloat16),
        w_ref[...].astype(jnp.bfloat16),
        preferred_element_type=jnp.float32,
    )
    o_ref[...] = (acc + b_ref[...].astype(jnp.float32)).astype(o_ref.dtype)


def _linear_kernel_multi(x_ref, w_ref, b_ref, o_ref, acc_ref):
    k = pl.program_id(2)

    @pl.when(k == 0)
    def _():
        acc_ref[...] = jnp.zeros_like(acc_ref)

    acc_ref[...] += jnp.dot(
        x_ref[...].astype(jnp.bfloat16),
        w_ref[...].astype(jnp.bfloat16),
        preferred_element_type=jnp.float32,
    )

    @pl.when(k == pl.num_programs(2) - 1)
    def _():
        o_ref[...] = (acc_ref[...] + b_ref[...].astype(jnp.float32)).astype(o_ref.dtype)


def pallas_linear(x2d, w, b2d, *, out_dtype):
    """x2d: [M, K], w: [K, N] (bf16 at rest), b2d: [1, N] f32 -> [M, N]."""
    M, K = x2d.shape
    K2, N = w.shape
    assert K == K2
    tm = _choose_tile(M, 512, (512, 256, 128, 8))
    tn = _choose_tile(N, 1024, (512, 256, 128))

    if K <= 2048:  # single full-K MXU pass: no reduction grid axis at all
        grid = (M // tm, N // tn)
        in_specs = [
            pl.BlockSpec((tm, K), lambda i, j: (i, 0)),
            pl.BlockSpec((K, tn), lambda i, j: (0, j)),
            pl.BlockSpec((1, tn), lambda i, j: (0, j)),
        ]
        out_spec = pl.BlockSpec((tm, tn), lambda i, j: (i, j))
        kernel, scratch, sem = _linear_kernel_single, [], ("parallel", "parallel")
    else:
        tk = _choose_tile(K, 1024, (512, 256, 128))
        grid = (M // tm, N // tn, K // tk)
        in_specs = [
            pl.BlockSpec((tm, tk), lambda i, j, k: (i, k)),
            pl.BlockSpec((tk, tn), lambda i, j, k: (k, j)),
            pl.BlockSpec((1, tn), lambda i, j, k: (0, j)),
        ]
        out_spec = pl.BlockSpec((tm, tn), lambda i, j, k: (i, j))
        kernel = _linear_kernel_multi
        scratch = [pltpu.VMEM((tm, tn), jnp.float32)]
        sem = ("parallel", "parallel", "arbitrary")

    return pl.pallas_call(
        kernel,
        out_shape=jax.ShapeDtypeStruct((M, N), out_dtype),
        grid_spec=pltpu.PrefetchScalarGridSpec(
            num_scalar_prefetch=0, grid=grid,
            in_specs=in_specs, out_specs=out_spec, scratch_shapes=scratch),
        compiler_params=_compiler_params(sem),
    )(x2d, w, b2d)


def pallas_qkv_linear(x2d, w3, b3, *, out_dtype):
    """qkv projection writing a [3, M, C] slab (no wrapper-side split needed).

    x2d: [M, K]; w3: [3, K, C] bf16 (q slice pre-scaled by 1/sqrt(hd));
    b3: [3, 1, C] f32 -> out [3, M, C] in out_dtype (bf16)."""
    M, K = x2d.shape
    three, K2, C = w3.shape
    assert three == 3 and K == K2
    tm = _choose_tile(M, 512, (512, 256, 128, 8))

    if K <= 2048:
        grid = (M // tm, 3)
        in_specs = [
            pl.BlockSpec((tm, K), lambda i, j: (i, 0)),        # x resident across j
            pl.BlockSpec((None, K, C), lambda i, j: (j, 0, 0)),
            pl.BlockSpec((None, 1, C), lambda i, j: (j, 0, 0)),
        ]
        out_spec = pl.BlockSpec((None, tm, C), lambda i, j: (j, i, 0))
        kernel, scratch, sem = _linear_kernel_single, [], ("parallel", "parallel")
    else:
        tk = _choose_tile(K, 1024, (512, 256, 128))
        grid = (M // tm, 3, K // tk)
        in_specs = [
            pl.BlockSpec((tm, tk), lambda i, j, k: (i, k)),
            pl.BlockSpec((None, tk, C), lambda i, j, k: (j, k, 0)),
            pl.BlockSpec((None, 1, C), lambda i, j, k: (j, 0, 0)),
        ]
        out_spec = pl.BlockSpec((None, tm, C), lambda i, j, k: (j, i, 0))
        kernel = _linear_kernel_multi
        scratch = [pltpu.VMEM((tm, C), jnp.float32)]
        sem = ("parallel", "parallel", "arbitrary")

    return pl.pallas_call(
        kernel,
        out_shape=jax.ShapeDtypeStruct((3, M, C), out_dtype),
        grid_spec=pltpu.PrefetchScalarGridSpec(
            num_scalar_prefetch=0, grid=grid,
            in_specs=in_specs, out_specs=out_spec, scratch_shapes=scratch),
        compiler_params=_compiler_params(sem),
    )(x2d, w3, b3)


# ---------------------------------------------------------------------------
# Flash-style causal attention, operating directly on qkv3 = [3, B, T, C] bf16.
# Grid: (B, T//tq, T//tk) with the KV axis last; per-head softmax state in VMEM.
# Output written as full C-wide rows into [B, T, C] (lane-dense, no transposes).
# ---------------------------------------------------------------------------
def _attn_kernel(q_ref, k_ref, v_ref, o_ref, m_ref, l_ref, acc_ref,
                 *, n_head, head_dim, tq, tk):
    qi = pl.program_id(1)
    ki = pl.program_id(2)

    @pl.when(ki == 0)
    def _():
        m_ref[...] = jnp.full_like(m_ref, NEG_BIG)
        l_ref[...] = jnp.zeros_like(l_ref)
        acc_ref[...] = jnp.zeros_like(acc_ref)

    q_start = qi * tq
    k_start = ki * tk

    # Causal skip: tiles entirely above the diagonal do no MXU/EUP work (the
    # K/V index_map clamp already prevents their DMA).
    @pl.when(k_start <= q_start + (tq - 1))
    def _():
        row = q_start + lax.broadcasted_iota(jnp.int32, (tq, tk), 0)
        col = k_start + lax.broadcasted_iota(jnp.int32, (tq, tk), 1)
        causal = col <= row  # shared across heads

        for h in range(n_head):
            sl = slice(h * head_dim, (h + 1) * head_dim)
            q_h = q_ref[:, sl]                    # (tq, hd) bf16, already scaled
            k_h = k_ref[:, sl]                    # (tk, hd) bf16
            s = lax.dot_general(q_h, k_h, (((1,), (1,)), ((), ())),
                                preferred_element_type=jnp.float32)  # (tq, tk)
            s = jnp.where(causal, s, NEG_BIG)

            m_prev = m_ref[h]
            m_new = jnp.maximum(m_prev, jnp.max(s, axis=-1, keepdims=True))
            alpha = jnp.exp(m_prev - m_new)
            p = jnp.exp(s - m_new)                # f32
            l_ref[h] = alpha * l_ref[h] + jnp.sum(p, axis=-1, keepdims=True)
            acc_ref[h] = alpha * acc_ref[h] + jnp.dot(
                p.astype(jnp.bfloat16), v_ref[:, sl],
                preferred_element_type=jnp.float32)
            m_ref[h] = m_new

    @pl.when(ki == pl.num_programs(2) - 1)
    def _():
        for h in range(n_head):
            sl = slice(h * head_dim, (h + 1) * head_dim)
            inv = pl.reciprocal(l_ref[h], approx=False)  # once per q tile: exact is free
            o_ref[:, sl] = (acc_ref[h] * inv).astype(o_ref.dtype)


def pallas_causal_attention(qkv3, n_head):
    """qkv3: [3, B, T, C] (bf16) -> [B, T, C] (same dtype), causal attention."""
    three, B, T, C = qkv3.shape
    assert three == 3 and C % n_head == 0
    hd = C // n_head

    tq = _choose_tile(T, 256, (256, 128, 8))
    tk = _choose_tile(T, 512, (512, 256, 128, 8))

    kernel = functools.partial(_attn_kernel, n_head=n_head, head_dim=hd, tq=tq, tk=tk)

    def q_map(b, qi, ki):
        return (0, b, qi, 0)

    def kv_map(which):
        def f(b, qi, ki):
            # Clamp at the causal diagonal: above-diagonal KV tiles map to the
            # already-resident block -> no DMA issued for skipped tiles.
            last_needed = (qi * tq + (tq - 1)) // tk
            return (which, b, jnp.minimum(ki, last_needed), 0)
        return f

    return pl.pallas_call(
        kernel,
        out_shape=jax.ShapeDtypeStruct((B, T, C), qkv3.dtype),
        grid_spec=pltpu.PrefetchScalarGridSpec(
            num_scalar_prefetch=0,
            grid=(B, T // tq, T // tk),
            in_specs=[
                pl.BlockSpec((None, None, tq, C), q_map),
                pl.BlockSpec((None, None, tk, C), kv_map(1)),
                pl.BlockSpec((None, None, tk, C), kv_map(2)),
            ],
            out_specs=pl.BlockSpec((None, tq, C), lambda b, qi, ki: (b, qi, 0)),
            scratch_shapes=[
                pltpu.VMEM((n_head, tq, 1), jnp.float32),   # running max m
                pltpu.VMEM((n_head, tq, 1), jnp.float32),   # running denom l
                pltpu.VMEM((n_head, tq, hd), jnp.float32),  # output accumulator
            ],
        ),
        compiler_params=_compiler_params(("parallel", "parallel", "arbitrary")),
    )(qkv3, qkv3, qkv3)


# ---------------------------------------------------------------------------
# Parameter preparation (once, "at init") + module wrapper.
# ---------------------------------------------------------------------------
def prepare_params(params, n_head):
    """bf16 weights at rest; w_attn reshaped to [3, C, C] with 1/sqrt(hd) folded
    into the q slice (exact); biases kept f32 (added to the f32 accumulator)."""
    w_attn = jnp.asarray(params["w_attn"], jnp.float32)   # [C, 3C], [in, out]
    b_attn = jnp.asarray(params["b_attn"], jnp.float32)   # [3C]
    C = w_attn.shape[0]
    hd = C // n_head
    scale = 1.0 / math.sqrt(hd)

    w3 = w_attn.reshape(C, 3, C).transpose(1, 0, 2)        # [3, C, C] (q, k, v)
    b3 = b_attn.reshape(3, 1, C)
    w3 = w3.at[0].multiply(scale)
    b3 = b3.at[0].multiply(scale)
    return {
        "w_qkv": w3.astype(jnp.bfloat16),
        "b_qkv": b3,
        "w_proj": jnp.asarray(params["w_proj"]).astype(jnp.bfloat16),
        "b_proj": jnp.asarray(params["b_proj"], jnp.float32).reshape(1, -1),
    }


def causal_self_attention(x, prepared, n_head):
    B, T, C = x.shape
    # qkv projection -> [3, B*T, C] bf16 (q already scaled), reshape is free.
    qkv3 = pallas_qkv_linear(x.reshape(B * T, C), prepared["w_qkv"], prepared["b_qkv"],
                             out_dtype=jnp.bfloat16)
    qkv3 = qkv3.reshape(3, B, T, C)
    # Flash attention directly on the [3, B, T, C] slab -> [B, T, C] bf16.
    y = pallas_causal_attention(qkv3, n_head)
    # Output projection back to the input dtype.
    out = pallas_linear(y.reshape(B * T, C), prepared["w_proj"], prepared["b_proj"],
                        out_dtype=x.dtype)
    # TODO(synk): attn_dropout / resid_dropout omitted (dropout=0.0 / eval -> identity).
    return out.reshape(B, T, C)


# Pure-JAX f32 reference (matches the PyTorch module semantics).
def reference(x, params, n_head):
    B, T, C = x.shape
    hd = C // n_head
    qkv = x @ params["w_attn"] + params["b_attn"]
    q, k, v = jnp.split(qkv, 3, axis=2)
    q = q.reshape(B, T, n_head, hd).transpose(0, 2, 1, 3)
    k = k.reshape(B, T, n_head, hd).transpose(0, 2, 1, 3)
    v = v.reshape(B, T, n_head, hd).transpose(0, 2, 1, 3)
    s = jnp.einsum("bhqd,bhkd->bhqk", q, k) / math.sqrt(hd)
    mask = jnp.tril(jnp.ones((T, T), dtype=bool))
    s = jnp.where(mask, s, -jnp.inf)
    att = jax.nn.softmax(s, axis=-1)
    y = jnp.einsum("bhqk,bhkd->bhqd", att, v)
    y = y.transpose(0, 2, 1, 3).reshape(B, T, C)
    return y @ params["w_proj"] + params["b_proj"]


def make_params(key, C):
    k1, k2, k3, k4 = jax.random.split(key, 4)
    return {
        # stored as [in, out] (transpose of torch.nn.Linear.weight)
        "w_attn": jax.random.normal(k1, (C, 3 * C), dtype=jnp.float32) * 0.02,
        "b_attn": jax.random.normal(k2, (3 * C,), dtype=jnp.float32) * 0.02,
        "w_proj": jax.random.normal(k3, (C, C), dtype=jnp.float32) * 0.02,
        "b_proj": jax.random.normal(k4, (C,), dtype=jnp.float32) * 0.02,
    }


if __name__ == "__main__":
    key = jax.random.PRNGKey(0)

    # Config 1: small shapes per spec.  Config 2: exercises multi-KV-tile
    # flash attention, the causal DMA clamp and the tiled linear grid.
    for (B, T, C, n_head) in [(2, 16, 32, 4), (2, 1024, 128, 2)]:
        key, kx, kp = jax.random.split(key, 3)
        x = jax.random.normal(kx, (B, T, C), dtype=jnp.float32)
        params = make_params(kp, C)
        prepared = prepare_params(params, n_head)

        y = causal_self_attention(x, prepared, n_head)
        y = jax.block_until_ready(y)

        y_ref = reference(x, params, n_head)
        assert y.shape == (B, T, C)
        err = float(jnp.max(jnp.abs(y.astype(jnp.float32) - y_ref)))
        # bf16 at-rest activations/weights + bf16 MXU operands -> relaxed tolerance.
        assert err < 2e-2, f"mismatch vs reference (B={B},T={T},C={C}): max abs err {err}"

    print("KERNEL_OK")
</pallas_src>

<mosaic_0001>
module attributes {stable_mosaic.version = 11 : i64} {
  func.func @_linear_kernel_single(%arg0: i32, %arg1: i32, %arg2: memref<32x32xf32, #tpu.memory_space<vmem>>, %arg3: memref<1x32x32xbf16, #tpu.memory_space<vmem>>, %arg4: memref<1x1x32xf32, #tpu.memory_space<vmem>>, %arg5: memref<1x32x32xbf16, #tpu.memory_space<vmem>>) attributes {dimension_semantics = [#tpu.dimension_semantics<parallel>, #tpu.dimension_semantics<parallel>], iteration_bounds = array<i64: 1, 3>, scalar_prefetch = 0 : i64, scratch_operands = 0 : i64, tpu.core_type = #tpu.core_type<tc>, window_params = [{transform_indices = @transform_0, window_bounds = array<i64: 32, 32>}, {transform_indices = @transform_1, window_bounds = array<i64: 1, 32, 32>}, {transform_indices = @transform_2, window_bounds = array<i64: 1, 1, 32>}, {transform_indices = @transform_3, window_bounds = array<i64: 1, 32, 32>}]} {
    %c0 = arith.constant 0 : index
    %c0_0 = arith.constant 0 : index
    %0 = vector.load %arg2[%c0, %c0_0] : memref<32x32xf32, #tpu.memory_space<vmem>>, vector<32x32xf32>
    %1 = arith.truncf %0 : vector<32x32xf32> to vector<32x32xbf16>
    %c0_1 = arith.constant 0 : index
    %c0_2 = arith.constant 0 : index
    %c0_3 = arith.constant 0 : index
    %2 = vector.load %arg3[%c0_1, %c0_2, %c0_3] : memref<1x32x32xbf16, #tpu.memory_space<vmem>>, vector<1x32x32xbf16>
    %3 = vector.shape_cast %2 : vector<1x32x32xbf16> to vector<32x32xbf16>
    %cst = arith.constant dense<0.000000e+00> : vector<32x32xf32>
    %4 = tpu.matmul %1, %3, %cst {dimension_numbers = #tpu.dot_dimension_numbers<[1], [0], [0], [1], [0, 0, 1, 1], [], []>} : vector<32x32xbf16>, vector<32x32xbf16>, vector<32x32xf32> -> vector<32x32xf32>
    %c0_4 = arith.constant 0 : index
    %c0_5 = arith.constant 0 : index
    %c0_6 = arith.constant 0 : index
    %5 = vector.load %arg4[%c0_4, %c0_5, %c0_6] : memref<1x1x32xf32, #tpu.memory_space<vmem>>, vector<1x1x32xf32>
    %6 = vector.shape_cast %5 : vector<1x1x32xf32> to vector<1x32xf32>
    %7 = vector.broadcast %6 : vector<1x32xf32> to vector<32x32xf32>
    %8 = arith.addf %4, %7 : vector<32x32xf32>
    %9 = arith.truncf %8 : vector<32x32xf32> to vector<32x32xbf16>
    %c0_7 = arith.constant 0 : index
    %c0_8 = arith.constant 0 : index
    %c0_9 = arith.constant 0 : index
    %10 = vector.load %arg5[%c0_7, %c0_8, %c0_9] : memref<1x32x32xbf16, #tpu.memory_space<vmem>>, vector<1x32x32xbf16>
    %11 = vector.shape_cast %10 : vector<1x32x32xbf16> to vector<32x32xbf16>
    %12 = vector.shape_cast %9 : vector<32x32xbf16> to vector<1x32x32xbf16>
    tpu.vector_store %arg5[%c0_7, %c0_8, %c0_9], %12 {strides = array<i32>} : memref<1x32x32xbf16, #tpu.memory_space<vmem>>, vector<1x32x32xbf16>,
    return
  }
  func.func @transform_0(%arg0: i32, %arg1: i32) -> (i32, i32) {
    %c0_i32 = arith.constant 0 : i32
    %c0_i32_0 = arith.constant 0 : i32
    return %arg0, %c0_i32 : i32, i32
  }
  func.func @transform_1(%arg0: i32, %arg1: i32) -> (i32, i32, i32) {
    %c0_i32 = arith.constant 0 : i32
    %c0_i32_0 = arith.constant 0 : i32
    %c0_i32_1 = arith.constant 0 : i32
    return %arg1, %c0_i32, %c0_i32_0 : i32, i32, i32
  }
  func.func @transform_2(%arg0: i32, %arg1: i32) -> (i32, i32, i32) {
    %c0_i32 = arith.constant 0 : i32
    %c0_i32_0 = arith.constant 0 : i32
    %c0_i32_1 = arith.constant 0 : i32
    return %arg1, %c0_i32, %c0_i32_0 : i32, i32, i32
  }
  func.func @transform_3(%arg0: i32, %arg1: i32) -> (i32, i32, i32) {
    %c0_i32 = arith.constant 0 : i32
    %c0_i32_0 = arith.constant 0 : i32
    return %arg1, %arg0, %c0_i32 : i32, i32, i32
  }
}

</mosaic_0001>

<bundles_post_ra>
// kernel: tpu_custom_call.1
= control target key start
LH: loop header
LB: loop body
LE: loop exit
PB: predicated region body
PF: predicated region fallthrough
CT: control target
= control target key end

     0   :  { %8 = vsyncpa [#allocation3], 0  ;;  %s998_s0 = inlined_call_operand.hbm [shape: f32[32,32], index: 0, kind: input, shape index: {}]   ;;  %s999_s1 = inlined_call_operand.hbm [shape: bf16[3,32,32], index: 1, kind: input, shape index: {}]   ;;  %s1000_s2 = inlined_call_operand.vmem [shape: f32[3,1,32], index: 2, kind: input, shape index: {}]   ;;  %s1001_s3 = inlined_call_operand.hbm [shape: bf16[3,32,32], index: 3, kind: output, shape index: {}]  }
   0x1   :  { %9 = vsyncpa [#allocation6], 0 }
   0x2   :  { %11 = vsyncpa [#allocation6 + $0x1], 0 }
   0x3   :  { %12 = vsyncpa [#allocation4], 0 }
   0x4   :  { %14 = vsyncpa [#allocation4 + $0x1], 0  ;;  %s772_s12 = smov 0   ;;  %s774_s13 = smov 0  }
   0x5   :  { %s776_s14 = smov 0   ;;  %s778_s15 = smov 0  }
   0x6   :  { %s780_s16 = smov 0   ;;  %s782_s17 = smov 0  }
   0x7 LB: > { %s472_s18 = sadd.s32 4294967295, %s741_s17   ;;  %s473_s19 = sadd.s32 4294967294, %s741_s17   ;;  %s741_s17 = sphi %s782_s17, %s20_s17   ;;  %s737_s16 = sphi %s780_s16, %s1024_s16   ;;  %s733_s15 = sphi %s778_s15, %s1023_s15   ;;  %s729_s14 = sphi %s776_s14, %s1022_s14   ;;  %s725_s13 = sphi %s774_s13, %s1021_s13   ;;  %s721_s12 = sphi %s772_s12, %s1020_s12  }
   0x8   : > { %p78_p0 = scmp.ne.s32.totalorder %s725_s13, %s721_s12  ;;  %p806_p1 = scmp.eq.s32.totalorder %s472_s18, 0 }
   0x9   : > { %p810_p2 = scmp.eq.s32.totalorder %s472_s18, 2  ;;  %p136_p3 = scmp.eq.s32.totalorder %s473_s19, 2 }
   0xa   : > { %s1006_s20 = scalar_select %p806_p1, 1, 0 }
   0xb   : > { %s1007_s21 = scalar_select %p810_p2, 1, 0 }
   0xc   : > { %p816_p4 = por %p806_p1, %p78_p0  ;;  %p474_p5 = scmp.ge.s32.totalorder %s741_s17, 1 }
   0xd   : > { %p821_p6 = por %p136_p3, %p78_p0  ;;  %p143_p7 = scmp.lt.s32.totalorder %s741_s17, 4 }
   0xe   : > { %s1008_s22 = scalar_select %p816_p4, 1, 0 }
   0xf   : > { %s1009_s23 = scalar_select %p821_p6, 1, 0 }
  0x10   : > { %p826_p8 = pnand %p474_p5, %p143_p7  ;;  %s743_s25 = smov [#allocation2]  }
  0x11   : > { %s158_s26 = sshll.u32 %s743_s25, 4  ;;  %s29_s28 = sadd.s32 1, %s737_s16  ;;  %s159_s26 = int_to_ptr.vmem [resolvable:$true] %s158_s26 }
  0x12   : > { %s1010_s24 = scalar_select %p826_p8, 1, 0 }
  0x13   : > { %p524_p9 = pneg %p826_p8  ;;  %s597_s4 = scalar_lea.hbm %s998_s0, 512 }
  0x14   : > { %p598_p11 = scmp.ne.s32.totalorder %s998_s0, %s597_s4  ;;  %p604_p3 = scmp.lt.u32.totalorder %s597_s4, %s998_s0 }
  0x15   : > { %p834_p10 = pnand %p524_p9, %p806_p1 }
  0x17   : > { %p599_p12 = pneg %p834_p10 }
  0x19   : > { %p600_p13 = pnand %p599_p12, %p598_p11 }
  0x1b   : > { %p601_p0 = pneg %p600_p13 }
  0x1d   : > { %p606_p5 = pnand %p604_p3, %p601_p0 }
  0x1f   : > { %609 = shalt.err (!%p606_p5)
}
  0x20   : > { %s610_s9 = scalar_lea.vmem %s159_s26, 512  ;;  %p618_p4 = scmp.lt.s32.totalorder %s159_s26, %s159_s26 }
  0x21   : > { %p611_p7 = scmp.ne.s32.totalorder %s159_s26, %s610_s9  ;;  %p619_p1 = scmp.lt.s32.totalorder %s610_s9, %s610_s9 }
  0x23   : > { %p613_p9 = pnand %p611_p7, %p599_p12  ;;  %p620_p8 = por %p619_p1, %p618_p4 }
  0x25   : > { %p614_p6 = pneg %p613_p9 }
  0x27   : > { %p621_p2 = pnand %p620_p8, %p614_p6 }
  0x29   : > { %624 = shalt.err (!%p621_p2)
}
  0x2a   : > { %s744_s10 = smov 128   ;;  %s745_s11 = smov 8  }
  0x2b   : > { %527 = dma.hbm_to_vmem [thread:$0]  (!%p834_p10), %s998_s0, 512, %s159_s26, [#allocation3], %s744_s10, %s744_s10, %s745_s11  }
  0x2c   : > { %p30_p1 = scmp.ge.s32.totalorder %s29_s28, 3  ;;  %s65_s25 = sadd.s32 1, %s729_s14 }
  0x2d   : > { %p72_p2 = scmp.ne.s32.totalorder %s729_s14, %s725_s13  ;;  %p73_p4 = scmp.eq.s32.totalorder %s741_s17, 0 }
  0x2e   : > { %s1026_s28 = smov (%p30_p1, %s29_s28), 0  ;;  %p1013_p8 = scmp.ne.s32.totalorder %s1007_s21, 0 }
  0x2f   : > { %p861_p6 = por %p73_p4, %p72_p2  ;;  %s62_s27 = ssub.s32 %s737_s16, %s1026_s28 }
  0x30   : > { %p867_p11 = por %p1013_p8, %p72_p2  ;;  %p537_p12 = scmp.lt.s32.totalorder %s741_s17, 3 }
  0x31   : > { %p63_p10 = scmp.eq.s32.totalorder %s62_s27, 0  ;;  %s172_s26 = sand.u32 1, %s729_s14  }
  0x32   : > { %s477_s4 = sshll.u32 %s172_s26, 4  ;;  %s498_s6 = sshll.u32 %s737_s16, 8 }
  0x33   : > { %s876_s5 = scalar_select %p63_p10, %s729_s14, %s65_s25  }
  0x34   : > { %s882_s9 = scalar_lea.hbm %s999_s1, %s498_s6  ;;  %s176_s21 = scalar_lea.vmem [#allocation5], %s477_s4 }
  0x35   : > { %s183_s10 = sshll.u32 %s176_s21, 4  ;;  %p888_p13 = pnand %p537_p12, %p861_p6  ;;  %s884_s10 = int_to_ptr.vmem [resolvable:$true] %s183_s10 }
  0x36   : > { %s892_s18 = scalar_lea.sflag [#allocation6], %s172_s26  ;;  %s625_s19 = scalar_lea.hbm %s882_s9, 256 }
  0x37   : > { %p626_p0 = scmp.ne.s32.totalorder %s882_s9, %s625_s19  ;;  %p627_p3 = pneg %p888_p13 }
  0x38   : > { %s630_s29 = scalar_lea.hbm %s999_s1, 768  ;;  %p631_p9 = scmp.lt.u32.totalorder %s882_s9, %s999_s1 }
  0x39   : > { %p628_p5 = pnand %p627_p3, %p626_p0  ;;  %p632_p1 = scmp.lt.u32.totalorder %s630_s29, %s625_s19 }
  0x3a   : > { %p634_p4 = scmp.lt.u32.totalorder %s625_s19, %s882_s9 }
  0x3b   : > { %p629_p7 = pneg %p628_p5  ;;  %p633_p2 = por %p632_p1, %p631_p9 }
  0x3d   : > { %p635_p6 = por %p634_p4, %p633_p2 }
  0x3f   : > { %p636_p8 = pnand %p635_p6, %p629_p7 }
  0x41   : > { %639 = shalt.err (!%p636_p8)
}
  0x42   : > { %s640_s26 = scalar_lea.vmem %s884_s10, 256  ;;  %s746_s7 = smov [#allocation5]  }
  0x43   : > { %p641_p12 = scmp.ne.s32.totalorder %s884_s10, %s640_s26  ;;  %s645_s8 = sshll.u32 %s746_s7, 4  ;;  %s646_s8 = int_to_ptr.vmem [resolvable:$false] %s645_s8 }
  0x44   : > { %s647_s21 = scalar_lea.vmem %s646_s8, 512  ;;  %p648_p5 = scmp.lt.s32.totalorder %s884_s10, %s646_s8 }
  0x45   : > { %p643_p10 = pnand %p641_p12, %p627_p3  ;;  %p649_p9 = scmp.lt.s32.totalorder %s647_s21, %s640_s26 }
  0x47   : > { %p644_p0 = pneg %p643_p10  ;;  %p650_p1 = por %p649_p9, %p648_p5 }
  0x49   : > { %p651_p2 = pnand %p650_p1, %p644_p0 }
  0x4b   : > { %654 = shalt.err (!%p651_p2)
}
  0x4c   : > { %s747_s19 = smov 64   ;;  %s748_s25 = smov 4  }
  0x4d   : > { %531 = dma.hbm_to_vmem [thread:$0]  (!%p888_p13), %s882_s9, 256, %s884_s10, %s892_s18, %s747_s19, %s747_s19, %s748_s25  }
  0x4e   : > { %p1016_p3 = scmp.ne.s32.totalorder %s1010_s24, 0 }
  0x4f   : > { %p1017_p7 = scmp.ne.s32.totalorder (!%p1016_p3), %s1006_s20, 0 }
  0x50   : > { %201 = sbr.rel (%p1016_p3) target bundleno = 335 (0x14f), region = 32 }
  0x57   : > { %708 = dma.done.wait (%p1017_p7), [#allocation3], 512  }
  0x58   : > { %710 = vsyncadd (%p1017_p7), [#allocation3], 4294966784  ;;  %s927_s27 = sand.u32 1, %s725_s13   ;;  %p1018_p4 = scmp.ne.s32.totalorder %s1008_s22, 0 }
  0x59   : > { %s482_s29 = sshll.u32 %s927_s27, 4  ;;  %s208_s4 = scalar_lea.sflag [#allocation6], %s927_s27 }
  0x5a   : > { %s211_s6 = scalar_lea.vmem [#allocation5], %s482_s29 }
  0x5b   : > { %712 = dma.done.wait (%p1018_p4), %s208_s4, 256  }
  0x5c   : > { %714 = vsyncadd (%p1018_p4), %s208_s4, 4294967040  ;;  %v595_v0 = vld [vmem:[%s211_s6] sm:$0xff]   ;;  %v596_v1 = vld [vmem:[%s211_s6 + $0x8] sm:$0xff]   ;;  %vm272_vm0 = vcmask 261120   ;;  %p238_p13 = scmp.lt.s32.totalorder %s733_s15, 2  ;;  %s236_s10 = scalar_lea.vmem [#allocation7], %s482_s29 }
  0x5d   : > { %508 = vmatprep.subr.bf16.mxu0 %v595_v0  ;;  %v243_v2 = vld [vmem:[#allocation2] sm:$0xff]  ;;  %v244_v3 = vld [vmem:[#allocation2 + $0x8] sm:$0xff]  ;;  %v245_v5 = vld [vmem:[#allocation2 + $0x10] sm:$0xff]  ;;  %s365_s11 = sshll.u32 %s236_s10, 4  ;;  %vm344_vm1 = vcmask 257024   ;;  %s503_s18 = sshll.u32 %s733_s15, 8  ;;  %s941_s11 = int_to_ptr.vmem [resolvable:$true] %s365_s11 }
  0x5e   : > { %509 = vmatpush3.bf16.msra.mxu0 %v595_v0  ;;  %v247_v4 = vpack.c.bf16 %v244_v3, %v243_v2  ;;  %v246_v6 = vld [vmem:[#allocation2 + $0x18] sm:$0xff]  ;;  %s239_s20 = scalar_select %p238_p13, %s733_s15, 2 }
  0x5f   : > { %510 = vmatprep.subr.bf16.mxu0 %v596_v1  ;;  %v248_v7 = vpack.c.bf16 %v246_v6, %v245_v5  ;;  %s947_s8 = scalar_lea.hbm %s1001_s3, %s503_s18  ;;  %s350_s15 = scalar_lea.sflag [#allocation4], %s927_s27 }
  0x60   : > { %512 = vmatprep.mubr.msk.bf16.mxu0 %vm272_vm0, %v247_v4  ;;  %s240_s9 = scalar_lea.vmem %s1000_s2, %s239_s20  ;;  %s655_s21 = scalar_lea.vmem %s941_s11, 256 }
  0x61   : > { %v484_v8 = vld [vmem:[%s240_s9] ss:$0 sm:$0xff]  ;;  %p656_p6 = scmp.ne.s32.totalorder %s941_s11, %s655_s21  ;;  %s749_s19 = smov [#allocation7]  }
  0x62   : > { %511 = vmatpush3.bf16.msra.mxu0 %v596_v1  ;;  %s659_s25 = sshll.u32 %s749_s19, 4  ;;  %s660_s25 = int_to_ptr.vmem [resolvable:$false] %s659_s25 }
  0x63   : > { %p657_p8 = pnand %p656_p6, %p867_p11  ;;  %s661_s29 = scalar_lea.vmem %s660_s25, 512 }
  0x64   : > { %p662_p10 = scmp.lt.s32.totalorder %s941_s11, %s660_s25  ;;  %p663_p0 = scmp.lt.s32.totalorder %s661_s29, %s655_s21 }
  0x65   : > { %513 = vmatmul.mubr.msk.bf16.vlgmr.msra.gmra.mrb[0].mxu0 %vm272_vm0, %v248_v7  ;;  %p658_p12 = pneg %p657_p8 }
  0x66   : > { %p664_p5 = por %p663_p0, %p662_p10 }
  0x68   : > { %p665_p9 = pnand %p664_p5, %p658_p12 }
 0x138   : > { %v514_v9 = vpop.f32.mrb[0].mxu0 }
 0x139   : > { %v322_v10 = vadd.f32 %v514_v9, %v484_v8  ;;  %v313_v11 = vpop.f32.mrb[1].mxu0 }
 0x13a   : > { %v314_v12 = vadd.f32 %v484_v8, %v313_v11  ;;  %v515_v13 = vpop.f32.mrb[2].mxu0 }
 0x13b   : > { %v501_v14 = vpack.c.bf16 %v322_v10, %v322_v10  ;;  %v325_v15 = vadd.f32 %v515_v13, %v484_v8  ;;  %v316_v16 = vpop.f32.mrb[3].mxu0 }
 0x13c   : > { %v499_v17 = vpack.c.bf16 %v314_v12, %v314_v12  ;;  %v317_v18 = vadd.f32 %v484_v8, %v316_v16 }
 0x13d   : > { %347 = vst.msk [vmem:[%s236_s10 + $0x8] sm:$0xf] %vm344_vm1, %v501_v14  ;;  %v502_v19 = vpack.c.bf16 %v325_v15, %v325_v15 }
 0x13e   : > { %345 = vst.msk [vmem:[%s236_s10] sm:$0xf] %vm344_vm1, %v499_v17  ;;  %v500_v20 = vpack.c.bf16 %v317_v18, %v317_v18 }
 0x13f   : > { %348 = vst.msk [vmem:[%s236_s10 + $0xc] sm:$0xf] %vm344_vm1, %v502_v19 }
 0x140   : > { %346 = vst.msk [vmem:[%s236_s10 + $0x4] sm:$0xf] %vm344_vm1, %v500_v20 }
 0x141   : > { %668 = shalt.err (!%p665_p9)
}
 0x142   : > { %s669_s4 = scalar_lea.hbm %s947_s8, 256  ;;  %s673_s22 = scalar_lea.hbm %s1001_s3, 768 }
 0x143   : > { %p670_p1 = scmp.ne.s32.totalorder %s947_s8, %s669_s4  ;;  %p674_p7 = scmp.lt.u32.totalorder %s947_s8, %s1001_s3 }
 0x144   : > { %p675_p4 = scmp.lt.u32.totalorder %s673_s22, %s669_s4  ;;  %p677_p6 = scmp.lt.u32.totalorder %s669_s4, %s947_s8 }
 0x145   : > { %p671_p2 = pnand %p670_p1, %p867_p11 }
 0x146   : > { %p676_p13 = por %p675_p4, %p674_p7 }
 0x147   : > { %p672_p3 = pneg %p671_p2 }
 0x148   : > { %p678_p8 = por %p677_p6, %p676_p13 }
 0x14a   : > { %p679_p12 = pnand %p678_p8, %p672_p3 }
 0x14c   : > { %682 = shalt.err (!%p679_p12)
}
 0x14d   : > { %s750_s10 = smov 64   ;;  %s751_s18 = smov 4  }
 0x14e   : > { %522 = dma.vmem_to_hbm [thread:$0]  (%p867_p11), %s941_s11, 256, %s947_s8, %s350_s15, %s750_s10, %s750_s10, %s751_s18  }
 0x14f PF: > { %p539_p10 = scmp.ge.s32.totalorder %s741_s17, 2  ;;  %s380_s26 = sand.u32 1, %s721_s12  }
 0x150   : > { %p1019_p0 = scmp.ne.s32.totalorder %s1009_s23, 0  ;;  %s381_s7 = scalar_lea.sflag [#allocation4], %s380_s26 }
 0x152   : > { %p533_p5 = pnand %p539_p10, %p1019_p0 }
 0x154   : > { %716 = dma.done.wait (!%p533_p5), %s381_s7, 256  }
 0x155   : > { %718 = vsyncadd (!%p533_p5), %s381_s7, 4294967040  ;;  %s20_s17 = sadd.s32 1, %s741_s17   ;;  %s1020_s12 = smov %s725_s13 }
 0x156   : > { %p17_p9 = scmp.ge.s32.totalorder %s20_s17, 5   ;;  %s1021_s13 = smov %s729_s14 }
 0x157   : > { %s1022_s14 = smov %s876_s5  ;;  %s1023_s15 = smov %s737_s16 }
 0x158   : > { %s1024_s16 = smov %s1026_s28  ;;  %19 = sbr.rel (!%p17_p9) target bundleno = 7 (0x7), region = 86 }
 0x15f   :  { %386 = vsyncpa [#allocation3], 1 }
 0x160   :  { %388 = vsyncpa [#allocation3 + $0x1], 1 }
 0x161   :  { %389 = vsyncpa [#allocation6], 1 }
 0x162   :  { %391 = vsyncpa [#allocation6 + $0x1], 1 }
 0x163   :  { %392 = vsyncpa [#allocation4], 1 }
 0x164   :  { %394 = vsyncpa [#allocation4 + $0x1], 1 }

</bundles_post_ra>
